<compile_context>
chip_gen: v6e
topology: v6e:2x2x1
jax: 0.10.0
libtpu: 0.0.40
codegen_flags: <defaults>
</compile_context>

<pallas_src>
import jax
import jax.numpy as jnp
from jax.experimental import pallas as pl
from jax.experimental.pallas import tpu as pltpu

INPUT_DIMS = (28, 28)
IN_FEATURES = INPUT_DIMS[0] * INPUT_DIMS[1]                  # 784
LAYER_DIMS = [IN_FEATURES, 128, 32, 10, 32, 128, IN_FEATURES]

LANE = 128
SUBLANE = 16      # bf16 sublane packing; batch tiles are multiples of this
MAX_TILE_B = 512  # double-buffered tiles stay well inside scoped VMEM
                  # on v5e (16 MiB) / v6e (32 MiB) / v7x (32 MiB scoped, 64 MiB phys)


def _round_up(x, m):
    return ((x + m - 1) // m) * m


def _cdiv(a, b):
    return -(-a // b)


# Only interior layer widths are padded to lane-dense 128; the 784-wide
# input/output keep their true width (legal as a full-last-dim block).
# -> [784, 128, 128, 128, 128, 128, 784]
PADDED_DIMS = ([LAYER_DIMS[0]]
               + [_round_up(d, LANE) for d in LAYER_DIMS[1:-1]]
               + [LAYER_DIMS[-1]])


def autoenc_kernel(x_ref,
                   w1, b1, w2, b2, w3, b3, w4, b4, w5, b5, w6, b6,
                   o_ref):
    """One batch tile of the 6-layer MLP, fully in VMEM.

    x_ref : (TILE_B, 784) f32; cast to bf16 in-kernel for the MXU.
    w*    : bf16, interior dims zero-padded to 128.  Padding is exact:
            padded weight rows/cols and bias lanes are 0, so padded
            activation lanes stay exactly 0 after ReLU and never leak.
    b*    : f32, (1, out_pad).
    o_ref : (TILE_B, 784) bf16 post-sigmoid (true output width, no pad lanes).
    """

    def dense(h, w, b):
        acc = jnp.dot(h.astype(jnp.bfloat16), w[...],
                      preferred_element_type=jnp.float32)
        return acc + b[...]

    h = x_ref[...]
    # encoder
    h = jnp.maximum(dense(h, w1, b1), 0.0)
    h = jnp.maximum(dense(h, w2, b2), 0.0)
    h = jnp.maximum(dense(h, w3, b3), 0.0)
    # decoder
    h = jnp.maximum(dense(h, w4, b4), 0.0)
    h = jnp.maximum(dense(h, w5, b5), 0.0)
    logits = dense(h, w6, b6)
    # sigmoid(x) = 1 / (1 + exp(-x)); reciprocal goes to the EUP slot.
    sig = pl.reciprocal(1.0 + jnp.exp(-logits), approx=True)
    o_ref[...] = sig.astype(o_ref.dtype)


def init_params(key):
    """PyTorch-Linear-style init U(-1/sqrt(fan_in), 1/sqrt(fan_in)).

    Weights stored transposed relative to torch ((in, out)) so the kernel does
    x @ W directly; biases are (1, out). All f32, original (unpadded) shapes.
    """
    params = []
    for fan_in, fan_out in zip(LAYER_DIMS[:-1], LAYER_DIMS[1:]):
        key, kw, kb = jax.random.split(key, 3)
        bound = 1.0 / (fan_in ** 0.5)
        w = jax.random.uniform(kw, (fan_in, fan_out), jnp.float32, -bound, bound)
        b = jax.random.uniform(kb, (1, fan_out), jnp.float32, -bound, bound)
        params += [w, b]
    return params


def prepare_params(params):
    """One-time: zero-pad interior dims to 128, cast weights to bf16."""
    prepared = []
    for li, (fan_in, fan_out) in enumerate(zip(LAYER_DIMS[:-1], LAYER_DIMS[1:])):
        w, b = params[2 * li], params[2 * li + 1]
        pin, pout = PADDED_DIMS[li], PADDED_DIMS[li + 1]
        w_pad = jnp.zeros((pin, pout), jnp.bfloat16)
        w_pad = w_pad.at[:fan_in, :fan_out].set(w.astype(jnp.bfloat16))
        b_pad = jnp.zeros((1, pout), jnp.float32)
        b_pad = b_pad.at[:, :fan_out].set(b)
        prepared += [w_pad, b_pad]
    return prepared


def _choose_batch_tiling(b):
    """Pick (tile_b, b_pad): tile_b multiple of 16, >=2 grid steps if possible."""
    b16 = _round_up(b, SUBLANE)
    n_tiles = max(1, _cdiv(b16, MAX_TILE_B))
    # Prefer >= 2 grid steps so both v7x TensorCores get work (harmless on
    # single-TC v5e/v6e: the grid simply becomes a short sequential loop).
    if n_tiles == 1 and b16 > SUBLANE:
        n_tiles = 2
    tile_b = _round_up(_cdiv(b16, n_tiles), SUBLANE)
    b_pad = tile_b * n_tiles
    return tile_b, b_pad


def autoenc_forward(x_nchw, prepared_params):
    b = x_nchw.shape[0]
    x_flat = x_nchw.reshape(b, IN_FEATURES).astype(jnp.float32)   # nn.Flatten()

    tile_b, b_pad = _choose_batch_tiling(b)
    if b_pad != b:
        # Row-only padding (feature dim stays at its true 784 width).
        x_flat = jnp.pad(x_flat, ((0, b_pad - b), (0, 0)))

    grid = (b_pad // tile_b,)

    x_spec = pl.BlockSpec((tile_b, IN_FEATURES), lambda i: (i, 0))
    out_spec = pl.BlockSpec((tile_b, IN_FEATURES), lambda i: (i, 0))
    # Weights/biases: constant index_map -> DMA'd once, VMEM-resident.
    param_specs = [pl.BlockSpec(p.shape, lambda i: (0, 0))
                   for p in prepared_params]

    out = pl.pallas_call(
        autoenc_kernel,
        out_shape=jax.ShapeDtypeStruct((b_pad, IN_FEATURES), jnp.bfloat16),
        grid=grid,
        in_specs=[x_spec] + param_specs,
        out_specs=out_spec,
        compiler_params=pltpu.CompilerParams(
            dimension_semantics=("parallel",)),
    )(x_flat, *prepared_params)

    if b_pad != b:
        out = out[:b]
    # Output stays bf16 (post-sigmoid values in [0, 1]); halves output HBM
    # traffic vs f32 and easily meets the accuracy tolerance.
    return out.reshape(b, 1, *INPUT_DIMS)


def autoenc_ref(x_nchw, params):
    """Pure-JAX f32 reference (mirrors the PyTorch forward)."""
    b = x_nchw.shape[0]
    h = x_nchw.reshape(b, -1).astype(jnp.float32)
    for i in range(0, 12, 2):
        w, bias = params[i], params[i + 1]
        h = h @ w + bias
        if i < 10:
            h = jnp.maximum(h, 0.0)
    h = jax.nn.sigmoid(h)
    return h.reshape(b, 1, *INPUT_DIMS)


if __name__ == "__main__":
    key = jax.random.PRNGKey(0)
    key, kx = jax.random.split(key)

    batch = 8
    x = jax.random.normal(kx, (batch, 1, *INPUT_DIMS), jnp.float32)

    params = init_params(key)
    prepared = prepare_params(params)

    out = jax.block_until_ready(autoenc_forward(x, prepared))
    ref = autoenc_ref(x, params)

    assert out.shape == (batch, 1, *INPUT_DIMS), out.shape
    max_err = float(jnp.max(jnp.abs(out.astype(jnp.float32) - ref)))
    # bf16 weights/activations/output with f32 accumulation: post-sigmoid
    # error is tiny relative to the 5e-2 tolerance.
    assert max_err < 5e-2, f"mismatch vs reference, max abs err {max_err}"

    print("KERNEL_OK")
</pallas_src>

<mosaic_0001>
module attributes {stable_mosaic.version = 11 : i64} {
  func.func @autoenc_kernel(%arg0: i32, %arg1: memref<16x784xf32, #tpu.memory_space<vmem>>, %arg2: memref<784x128xbf16, #tpu.memory_space<vmem>>, %arg3: memref<1x128xf32, #tpu.memory_space<vmem>>, %arg4: memref<128x128xbf16, #tpu.memory_space<vmem>>, %arg5: memref<1x128xf32, #tpu.memory_space<vmem>>, %arg6: memref<128x128xbf16, #tpu.memory_space<vmem>>, %arg7: memref<1x128xf32, #tpu.memory_space<vmem>>, %arg8: memref<128x128xbf16, #tpu.memory_space<vmem>>, %arg9: memref<1x128xf32, #tpu.memory_space<vmem>>, %arg10: memref<128x128xbf16, #tpu.memory_space<vmem>>, %arg11: memref<1x128xf32, #tpu.memory_space<vmem>>, %arg12: memref<128x784xbf16, #tpu.memory_space<vmem>>, %arg13: memref<1x784xf32, #tpu.memory_space<vmem>>, %arg14: memref<16x784xbf16, #tpu.memory_space<vmem>>) attributes {dimension_semantics = [#tpu.dimension_semantics<parallel>], iteration_bounds = array<i64: 1>, scalar_prefetch = 0 : i64, scratch_operands = 0 : i64, tpu.core_type = #tpu.core_type<tc>, window_params = [{transform_indices = @transform_0, window_bounds = array<i64: 16, 784>}, {pipeline_mode = #tpu.pipeline_mode<synchronous>, transform_indices = @transform_1, window_bounds = array<i64: 784, 128>}, {pipeline_mode = #tpu.pipeline_mode<synchronous>, transform_indices = @transform_2, window_bounds = array<i64: 1, 128>}, {pipeline_mode = #tpu.pipeline_mode<synchronous>, transform_indices = @transform_3, window_bounds = array<i64: 128, 128>}, {pipeline_mode = #tpu.pipeline_mode<synchronous>, transform_indices = @transform_4, window_bounds = array<i64: 1, 128>}, {pipeline_mode = #tpu.pipeline_mode<synchronous>, transform_indices = @transform_5, window_bounds = array<i64: 128, 128>}, {pipeline_mode = #tpu.pipeline_mode<synchronous>, transform_indices = @transform_6, window_bounds = array<i64: 1, 128>}, {pipeline_mode = #tpu.pipeline_mode<synchronous>, transform_indices = @transform_7, window_bounds = array<i64: 128, 128>}, {pipeline_mode = #tpu.pipeline_mode<synchronous>, transform_indices = @transform_8, window_bounds = array<i64: 1, 128>}, {pipeline_mode = #tpu.pipeline_mode<synchronous>, transform_indices = @transform_9, window_bounds = array<i64: 128, 128>}, {pipeline_mode = #tpu.pipeline_mode<synchronous>, transform_indices = @transform_10, window_bounds = array<i64: 1, 128>}, {pipeline_mode = #tpu.pipeline_mode<synchronous>, transform_indices = @transform_11, window_bounds = array<i64: 128, 784>}, {pipeline_mode = #tpu.pipeline_mode<synchronous>, transform_indices = @transform_12, window_bounds = array<i64: 1, 784>}, {transform_indices = @transform_13, window_bounds = array<i64: 16, 784>}]} {
    %c0 = arith.constant 0 : index
    %c0_0 = arith.constant 0 : index
    %0 = vector.load %arg1[%c0, %c0_0] : memref<16x784xf32, #tpu.memory_space<vmem>>, vector<16x784xf32>
    %1 = arith.truncf %0 : vector<16x784xf32> to vector<16x784xbf16>
    %c0_1 = arith.constant 0 : index
    %c0_2 = arith.constant 0 : index
    %2 = vector.load %arg2[%c0_1, %c0_2] : memref<784x128xbf16, #tpu.memory_space<vmem>>, vector<784x128xbf16>
    %cst = arith.constant dense<0.000000e+00> : vector<16x128xf32>
    %3 = tpu.matmul %1, %2, %cst {dimension_numbers = #tpu.dot_dimension_numbers<[1], [0], [0], [1], [0, 0, 1, 1], [], []>} : vector<16x784xbf16>, vector<784x128xbf16>, vector<16x128xf32> -> vector<16x128xf32>
    %c0_3 = arith.constant 0 : index
    %c0_4 = arith.constant 0 : index
    %4 = vector.load %arg3[%c0_3, %c0_4] : memref<1x128xf32, #tpu.memory_space<vmem>>, vector<1x128xf32>
    %5 = vector.broadcast %4 : vector<1x128xf32> to vector<16x128xf32>
    %6 = arith.addf %3, %5 : vector<16x128xf32>
    %cst_5 = arith.constant 0.000000e+00 : f32
    %7 = vector.broadcast %cst_5 : f32 to vector<16x128xf32>
    %8 = arith.maximumf %6, %7 : vector<16x128xf32>
    %9 = arith.truncf %8 : vector<16x128xf32> to vector<16x128xbf16>
    %c0_6 = arith.constant 0 : index
    %c0_7 = arith.constant 0 : index
    %10 = vector.load %arg4[%c0_6, %c0_7] : memref<128x128xbf16, #tpu.memory_space<vmem>>, vector<128x128xbf16>
    %cst_8 = arith.constant dense<0.000000e+00> : vector<16x128xf32>
    %11 = tpu.matmul %9, %10, %cst_8 {dimension_numbers = #tpu.dot_dimension_numbers<[1], [0], [0], [1], [0, 0, 1, 1], [], []>} : vector<16x128xbf16>, vector<128x128xbf16>, vector<16x128xf32> -> vector<16x128xf32>
    %c0_9 = arith.constant 0 : index
    %c0_10 = arith.constant 0 : index
    %12 = vector.load %arg5[%c0_9, %c0_10] : memref<1x128xf32, #tpu.memory_space<vmem>>, vector<1x128xf32>
    %13 = vector.broadcast %12 : vector<1x128xf32> to vector<16x128xf32>
    %14 = arith.addf %11, %13 : vector<16x128xf32>
    %cst_11 = arith.constant 0.000000e+00 : f32
    %15 = vector.broadcast %cst_11 : f32 to vector<16x128xf32>
    %16 = arith.maximumf %14, %15 : vector<16x128xf32>
    %17 = arith.truncf %16 : vector<16x128xf32> to vector<16x128xbf16>
    %c0_12 = arith.constant 0 : index
    %c0_13 = arith.constant 0 : index
    %18 = vector.load %arg6[%c0_12, %c0_13] : memref<128x128xbf16, #tpu.memory_space<vmem>>, vector<128x128xbf16>
    %cst_14 = arith.constant dense<0.000000e+00> : vector<16x128xf32>
    %19 = tpu.matmul %17, %18, %cst_14 {dimension_numbers = #tpu.dot_dimension_numbers<[1], [0], [0], [1], [0, 0, 1, 1], [], []>} : vector<16x128xbf16>, vector<128x128xbf16>, vector<16x128xf32> -> vector<16x128xf32>
    %c0_15 = arith.constant 0 : index
    %c0_16 = arith.constant 0 : index
    %20 = vector.load %arg7[%c0_15, %c0_16] : memref<1x128xf32, #tpu.memory_space<vmem>>, vector<1x128xf32>
    %21 = vector.broadcast %20 : vector<1x128xf32> to vector<16x128xf32>
    %22 = arith.addf %19, %21 : vector<16x128xf32>
    %cst_17 = arith.constant 0.000000e+00 : f32
    %23 = vector.broadcast %cst_17 : f32 to vector<16x128xf32>
    %24 = arith.maximumf %22, %23 : vector<16x128xf32>
    %25 = arith.truncf %24 : vector<16x128xf32> to vector<16x128xbf16>
    %c0_18 = arith.constant 0 : index
    %c0_19 = arith.constant 0 : index
    %26 = vector.load %arg8[%c0_18, %c0_19] : memref<128x128xbf16, #tpu.memory_space<vmem>>, vector<128x128xbf16>
    %cst_20 = arith.constant dense<0.000000e+00> : vector<16x128xf32>
    %27 = tpu.matmul %25, %26, %cst_20 {dimension_numbers = #tpu.dot_dimension_numbers<[1], [0], [0], [1], [0, 0, 1, 1], [], []>} : vector<16x128xbf16>, vector<128x128xbf16>, vector<16x128xf32> -> vector<16x128xf32>
    %c0_21 = arith.constant 0 : index
    %c0_22 = arith.constant 0 : index
    %28 = vector.load %arg9[%c0_21, %c0_22] : memref<1x128xf32, #tpu.memory_space<vmem>>, vector<1x128xf32>
    %29 = vector.broadcast %28 : vector<1x128xf32> to vector<16x128xf32>
    %30 = arith.addf %27, %29 : vector<16x128xf32>
    %cst_23 = arith.constant 0.000000e+00 : f32
    %31 = vector.broadcast %cst_23 : f32 to vector<16x128xf32>
    %32 = arith.maximumf %30, %31 : vector<16x128xf32>
    %33 = arith.truncf %32 : vector<16x128xf32> to vector<16x128xbf16>
    %c0_24 = arith.constant 0 : index
    %c0_25 = arith.constant 0 : index
    %34 = vector.load %arg10[%c0_24, %c0_25] : memref<128x128xbf16, #tpu.memory_space<vmem>>, vector<128x128xbf16>
    %cst_26 = arith.constant dense<0.000000e+00> : vector<16x128xf32>
    %35 = tpu.matmul %33, %34, %cst_26 {dimension_numbers = #tpu.dot_dimension_numbers<[1], [0], [0], [1], [0, 0, 1, 1], [], []>} : vector<16x128xbf16>, vector<128x128xbf16>, vector<16x128xf32> -> vector<16x128xf32>
    %c0_27 = arith.constant 0 : index
    %c0_28 = arith.constant 0 : index
    %36 = vector.load %arg11[%c0_27, %c0_28] : memref<1x128xf32, #tpu.memory_space<vmem>>, vector<1x128xf32>
    %37 = vector.broadcast %36 : vector<1x128xf32> to vector<16x128xf32>
    %38 = arith.addf %35, %37 : vector<16x128xf32>
    %cst_29 = arith.constant 0.000000e+00 : f32
    %39 = vector.broadcast %cst_29 : f32 to vector<16x128xf32>
    %40 = arith.maximumf %38, %39 : vector<16x128xf32>
    %41 = arith.truncf %40 : vector<16x128xf32> to vector<16x128xbf16>
    %c0_30 = arith.constant 0 : index
    %c0_31 = arith.constant 0 : index
    %42 = vector.load %arg12[%c0_30, %c0_31] : memref<128x784xbf16, #tpu.memory_space<vmem>>, vector<128x784xbf16>
    %cst_32 = arith.constant dense<0.000000e+00> : vector<16x784xf32>
    %43 = tpu.matmul %41, %42, %cst_32 {dimension_numbers = #tpu.dot_dimension_numbers<[1], [0], [0], [1], [0, 0, 1, 1], [], []>} : vector<16x128xbf16>, vector<128x784xbf16>, vector<16x784xf32> -> vector<16x784xf32>
    %c0_33 = arith.constant 0 : index
    %c0_34 = arith.constant 0 : index
    %44 = vector.load %arg13[%c0_33, %c0_34] : memref<1x784xf32, #tpu.memory_space<vmem>>, vector<1x784xf32>
    %45 = vector.broadcast %44 : vector<1x784xf32> to vector<16x784xf32>
    %46 = arith.addf %43, %45 : vector<16x784xf32>
    %cst_35 = arith.constant 0.000000e+00 : f32
    %47 = vector.broadcast %cst_35 : f32 to vector<16x784xf32>
    %48 = arith.subf %47, %46 : vector<16x784xf32>
    %49 = math.exp %48 : vector<16x784xf32>
    %cst_36 = arith.constant 1.000000e+00 : f32
    %50 = vector.broadcast %cst_36 : f32 to vector<16x784xf32>
    %51 = arith.addf %50, %49 : vector<16x784xf32>
    %52 = tpu.reciprocal %51 {approx = true} : vector<16x784xf32> -> vector<16x784xf32>
    %53 = arith.truncf %52 : vector<16x784xf32> to vector<16x784xbf16>
    %c0_37 = arith.constant 0 : index
    %c0_38 = arith.constant 0 : index
    %54 = vector.load %arg14[%c0_37, %c0_38] : memref<16x784xbf16, #tpu.memory_space<vmem>>, vector<16x784xbf16>
    tpu.vector_store %arg14[%c0_37, %c0_38], %53 {strides = array<i32>} : memref<16x784xbf16, #tpu.memory_space<vmem>>, vector<16x784xbf16>,
    return
  }
  func.func @transform_0(%arg0: i32) -> (i32, i32) {
    %c0_i32 = arith.constant 0 : i32
    %c0_i32_0 = arith.constant 0 : i32
    return %arg0, %c0_i32 : i32, i32
  }
  func.func @transform_1(%arg0: i32) -> (i32, i32) {
    %c0_i32 = arith.constant 0 : i32
    %c0_i32_0 = arith.constant 0 : i32
    %c0_i32_1 = arith.constant 0 : i32
    return %c0_i32, %c0_i32_0 : i32, i32
  }
  func.func @transform_2(%arg0: i32) -> (i32, i32) {
    %c0_i32 = arith.constant 0 : i32
    %c0_i32_0 = arith.constant 0 : i32
    %c0_i32_1 = arith.constant 0 : i32
    return %c0_i32, %c0_i32_0 : i32, i32
  }
  func.func @transform_3(%arg0: i32) -> (i32, i32) {
    %c0_i32 = arith.constant 0 : i32
    %c0_i32_0 = arith.constant 0 : i32
    %c0_i32_1 = arith.constant 0 : i32
    return %c0_i32, %c0_i32_0 : i32, i32
  }
  func.func @transform_4(%arg0: i32) -> (i32, i32) {
    %c0_i32 = arith.constant 0 : i32
    %c0_i32_0 = arith.constant 0 : i32
    %c0_i32_1 = arith.constant 0 : i32
    return %c0_i32, %c0_i32_0 : i32, i32
  }
  func.func @transform_5(%arg0: i32) -> (i32, i32) {
    %c0_i32 = arith.constant 0 : i32
    %c0_i32_0 = arith.constant 0 : i32
    %c0_i32_1 = arith.constant 0 : i32
    return %c0_i32, %c0_i32_0 : i32, i32
  }
  func.func @transform_6(%arg0: i32) -> (i32, i32) {
    %c0_i32 = arith.constant 0 : i32
    %c0_i32_0 = arith.constant 0 : i32
    %c0_i32_1 = arith.constant 0 : i32
    return %c0_i32, %c0_i32_0 : i32, i32
  }
  func.func @transform_7(%arg0: i32) -> (i32, i32) {
    %c0_i32 = arith.constant 0 : i32
    %c0_i32_0 = arith.constant 0 : i32
    %c0_i32_1 = arith.constant 0 : i32
    return %c0_i32, %c0_i32_0 : i32, i32
  }
  func.func @transform_8(%arg0: i32) -> (i32, i32) {
    %c0_i32 = arith.constant 0 : i32
    %c0_i32_0 = arith.constant 0 : i32
    %c0_i32_1 = arith.constant 0 : i32
    return %c0_i32, %c0_i32_0 : i32, i32
  }
  func.func @transform_9(%arg0: i32) -> (i32, i32) {
    %c0_i32 = arith.constant 0 : i32
    %c0_i32_0 = arith.constant 0 : i32
    %c0_i32_1 = arith.constant 0 : i32
    return %c0_i32, %c0_i32_0 : i32, i32
  }
  func.func @transform_10(%arg0: i32) -> (i32, i32) {
    %c0_i32 = arith.constant 0 : i32
    %c0_i32_0 = arith.constant 0 : i32
    %c0_i32_1 = arith.constant 0 : i32
    return %c0_i32, %c0_i32_0 : i32, i32
  }
  func.func @transform_11(%arg0: i32) -> (i32, i32) {
    %c0_i32 = arith.constant 0 : i32
    %c0_i32_0 = arith.constant 0 : i32
    %c0_i32_1 = arith.constant 0 : i32
    return %c0_i32, %c0_i32_0 : i32, i32
  }
  func.func @transform_12(%arg0: i32) -> (i32, i32) {
    %c0_i32 = arith.constant 0 : i32
    %c0_i32_0 = arith.constant 0 : i32
    %c0_i32_1 = arith.constant 0 : i32
    return %c0_i32, %c0_i32_0 : i32, i32
  }
  func.func @transform_13(%arg0: i32) -> (i32, i32) {
    %c0_i32 = arith.constant 0 : i32
    %c0_i32_0 = arith.constant 0 : i32
    return %arg0, %c0_i32 : i32, i32
  }
}

</mosaic_0001>

<bundles_post_ra>
// kernel: tpu_custom_call.1
= control target key start
LH: loop header
LB: loop body
LE: loop exit
PB: predicated region body
PF: predicated region fallthrough
CT: control target
= control target key end

     0   :  { %v2418_v43 = vmov 0.0   ;;  %vm2419_vm0 = vmmov 0   ;;  %vm466_vm1 = vcmask 130048   ;;  %s3039_s0 = inlined_call_operand.vmem [shape: f32[16,784], index: 0, kind: input, shape index: {}]   ;;  %s3040_s1 = inlined_call_operand.vmem [shape: bf16[784,128], index: 1, kind: input, shape index: {}]   ;;  %s3041_s2 = inlined_call_operand.vmem [shape: f32[1,128], index: 2, kind: input, shape index: {}]   ;;  %s3042_s3 = inlined_call_operand.vmem [shape: bf16[128,128], index: 3, kind: input, shape index: {}]   ;;  %s3043_s4 = inlined_call_operand.vmem [shape: f32[1,128], index: 4, kind: input, shape index: {}]   ;;  %s3044_s5 = inlined_call_operand.vmem [shape: bf16[128,128], index: 5, kind: input, shape index: {}]   ;;  %s3045_s6 = inlined_call_operand.vmem [shape: f32[1,128], index: 6, kind: input, shape index: {}]   ;;  %s3046_s7 = inlined_call_operand.vmem [shape: bf16[128,128], index: 7, kind: input, shape index: {}]   ;;  %s3047_s8 = inlined_call_operand.vmem [shape: f32[1,128], index: 8, kind: input, shape index: {}]   ;;  %s3048_s9 = inlined_call_operand.vmem [shape: bf16[128,128], index: 9, kind: input, shape index: {}]   ;;  %s3049_s10 = inlined_call_operand.vmem [shape: f32[1,128], index: 10, kind: input, shape index: {}]   ;;  %s3050_s11 = inlined_call_operand.vmem [shape: bf16[128,784], index: 11, kind: input, shape index: {}]   ;;  %s3051_s12 = inlined_call_operand.vmem [shape: f32[1,784], index: 12, kind: input, shape index: {}]   ;;  %s3052_s13 = inlined_call_operand.hbm [shape: bf16[16,784], index: 13, kind: output, shape index: {}]  }
   0x1   :  { %v2179_v0 = vld [vmem:[%s3040_s1 + $0x78] sm:$0xff]   ;;  %v2183_v4 = vld [vmem:[%s3040_s1 + $0x70] sm:$0xff]   ;;  %v2187_v8 = vld [vmem:[%s3040_s1 + $0x68] sm:$0xff]  }
   0x2   :  { %v2180_v1 = vld [vmem:[%s3040_s1 + $0x38] sm:$0xff]   ;;  %1954 = vmatprep.subr.bf16.mxu0 %v2179_v0  ;;  %v2184_v5 = vld [vmem:[%s3040_s1 + $0x30] sm:$0xff]   ;;  %v2188_v9 = vld [vmem:[%s3040_s1 + $0x28] sm:$0xff]  }
   0x3   :  { %v2181_v2 = vld [vmem:[%s3040_s1 + $0xf8] sm:$0xff]   ;;  %1955 = vmatpush3.bf16.msra.mxu0 %v2180_v1  ;;  %v2185_v6 = vld [vmem:[%s3040_s1 + $0xf0] sm:$0xff]   ;;  %v2189_v10 = vld [vmem:[%s3040_s1 + $0xe8] sm:$0xff]  }
   0x4   :  { %v2182_v3 = vld [vmem:[%s3040_s1 + $0xb8] sm:$0xff]   ;;  %1976 = vmatprep.subr.bf16.mxu1 %v2181_v2  ;;  %1956 = vmatprep.subr.bf16.mxu0 %v2183_v4  ;;  %v2186_v7 = vld [vmem:[%s3040_s1 + $0xb0] sm:$0xff]   ;;  %v2190_v11 = vld [vmem:[%s3040_s1 + $0xa8] sm:$0xff]  }
   0x5   :  { %1977 = vmatpush3.bf16.msra.mxu1 %v2182_v3  ;;  %v2191_v12 = vld [vmem:[%s3040_s1 + $0x60] sm:$0xff]   ;;  %v2195_v16 = vld [vmem:[%s3040_s1 + $0x58] sm:$0xff]   ;;  %v2199_v20 = vld [vmem:[%s3040_s1 + $0x50] sm:$0xff]  }
   0x6   :  { %1978 = vmatprep.subr.bf16.mxu1 %v2185_v6  ;;  %v2192_v13 = vld [vmem:[%s3040_s1 + $0x20] sm:$0xff]   ;;  %v2196_v17 = vld [vmem:[%s3040_s1 + $0x18] sm:$0xff]   ;;  %v2200_v21 = vld [vmem:[%s3040_s1 + $0x10] sm:$0xff]  }
   0x7   :  { %1957 = vmatpush3.bf16.msra.mxu0 %v2184_v5  ;;  %v2193_v14 = vld [vmem:[%s3040_s1 + $0xe0] sm:$0xff]   ;;  %v2197_v18 = vld [vmem:[%s3040_s1 + $0xd8] sm:$0xff]   ;;  %v2201_v22 = vld [vmem:[%s3040_s1 + $0xd0] sm:$0xff]  }
   0x8   :  { %1958 = vmatprep.subr.bf16.mxu0 %v2187_v8  ;;  %v2194_v15 = vld [vmem:[%s3040_s1 + $0xa0] sm:$0xff]   ;;  %v2198_v19 = vld [vmem:[%s3040_s1 + $0x98] sm:$0xff]   ;;  %v2202_v23 = vld [vmem:[%s3040_s1 + $0x90] sm:$0xff]  }
   0x9   :  { %1979 = vmatpush3.bf16.msra.mxu1 %v2186_v7  ;;  %v2203_v24 = vld [vmem:[%s3040_s1 + $0x48] sm:$0xff]   ;;  %v2207_v28 = vld [vmem:[%s3040_s1 + $0x40] sm:$0xff]   ;;  %v53_v36 = vld [vmem:[%s3039_s0 + $0x38] sm:$0xff] }
   0xa   :  { %1980 = vmatprep.subr.bf16.mxu1 %v2189_v10  ;;  %v2204_v25 = vld [vmem:[%s3040_s1 + $0x8] sm:$0xff]   ;;  %v2208_v29 = vld [vmem:[%s3040_s1] sm:$0xff]   ;;  %v2211_v38 = vld [vmem:[%s3040_s1 + $0x178] sm:$0xff]  }
   0xb   :  { %1959 = vmatpush3.bf16.msra.mxu0 %v2188_v9  ;;  %v2205_v26 = vld [vmem:[%s3040_s1 + $0xc8] sm:$0xff]   ;;  %v2209_v30 = vld [vmem:[%s3040_s1 + $0xc0] sm:$0xff]   ;;  %v49_v39 = vld [vmem:[%s3039_s0 + $0x18] sm:$0xff] }
   0xc   :  { %1960 = vmatprep.subr.bf16.mxu0 %v2191_v12  ;;  %v2206_v27 = vld [vmem:[%s3040_s1 + $0x88] sm:$0xff]   ;;  %v54_v32 = vld [vmem:[%s3039_s0 + $0x40] sm:$0xff]  ;;  %v56_v40 = vld [vmem:[%s3039_s0 + $0x50] sm:$0xff] }
   0xd   :  { %1981 = vmatpush3.bf16.msra.mxu1 %v2190_v11  ;;  %v47_v31 = vld [vmem:[%s3039_s0 + $0x8] sm:$0xff]  ;;  %v2210_v34 = vld [vmem:[%s3040_s1 + $0x80] sm:$0xff]   ;;  %v63_v41 = vpack.c.bf16 %v56_v40, %v49_v39  ;;  %v2212_v42 = vld [vmem:[%s3040_s1 + $0x138] sm:$0xff]  }
   0xe   :  { %1982 = vmatprep.subr.bf16.mxu1 %v2193_v14  ;;  %v61_v33 = vpack.c.bf16 %v54_v32, %v47_v31  ;;  %v46_v35 = vld [vmem:[%s3039_s0] sm:$0xff]  ;;  %v48_v44 = vld [vmem:[%s3039_s0 + $0x10] sm:$0xff]  ;;  %v55_v45 = vld [vmem:[%s3039_s0 + $0x48] sm:$0xff] }
   0xf   :  { %1961 = vmatpush3.bf16.msra.mxu0 %v2192_v13  ;;  %v60_v37 = vpack.c.bf16 %v53_v36, %v46_v35  ;;  %543 = vmatprep.mubr.bf16.mxu1 %v63_v41  ;;  %v62_v46 = vpack.c.bf16 %v55_v45, %v48_v44  ;;  %v2213_v47 = vld [vmem:[%s3040_s1 + $0x170] sm:$0xff]   ;;  %v2215_v49 = vld [vmem:[%s3040_s1 + $0x168] sm:$0xff]   ;;  %v2217_v51 = vld [vmem:[%s3040_s1 + $0x160] sm:$0xff]  }
  0x10   :  { %1962 = vmatprep.subr.bf16.mxu0 %v2195_v16  ;;  %502 = vmatprep.mubr.bf16.mxu0 %v61_v33  ;;  %v2214_v48 = vld [vmem:[%s3040_s1 + $0x130] sm:$0xff]   ;;  %v2216_v50 = vld [vmem:[%s3040_s1 + $0x128] sm:$0xff]   ;;  %v2218_v52 = vld [vmem:[%s3040_s1 + $0x120] sm:$0xff]  }
  0x11   :  { %1983 = vmatpush3.bf16.msra.mxu1 %v2194_v15  ;;  %v2219_v53 = vld [vmem:[%s3040_s1 + $0x158] sm:$0xff]   ;;  %v2221_v55 = vld [vmem:[%s3040_s1 + $0x150] sm:$0xff]   ;;  %v2227_v56 = vld [vmem:[%s3040_s1 + $0x180] sm:$0xff]  }
  0x12   :  { %1984 = vmatprep.subr.bf16.mxu1 %v2197_v18  ;;  %v2220_v54 = vld [vmem:[%s3040_s1 + $0x118] sm:$0xff]   ;;  %v51_v57 = vld [vmem:[%s3039_s0 + $0x28] sm:$0xff]  ;;  %v2222_v58 = vld [vmem:[%s3040_s1 + $0x110] sm:$0xff]  }
  0x13   :  { %1963 = vmatpush3.bf16.msra.mxu0 %v2196_v17  ;;  %v2223_v59 = vld [vmem:[%s3040_s1 + $0x148] sm:$0xff]   ;;  %v58_v60 = vld [vmem:[%s3039_s0 + $0x60] sm:$0xff]  ;;  %v52_v62 = vld [vmem:[%s3039_s0 + $0x30] sm:$0xff] }
  0x14   :  { %1964 = vmatprep.subr.bf16.mxu0 %v2199_v20  ;;  %v65_v61 = vpack.c.bf16 %v58_v60, %v51_v57  ;;  %v59_v63 = vld [vmem:[%s3039_s0 + $0x68] sm:$0xff]  ;;  %v2225_v2 = vld [vmem:[%s3040_s1 + $0x140] sm:$0xff]   ;;  %v57_v5 = vld [vmem:[%s3039_s0 + $0x58] sm:$0xff] }
  0x15   :  { %1985 = vmatpush3.bf16.msra.mxu1 %v2198_v19  ;;  %v66_v0 = vpack.c.bf16 %v59_v63, %v52_v62  ;;  %v2224_v1 = vld [vmem:[%s3040_s1 + $0x108] sm:$0xff]   ;;  %v2226_v3 = vld [vmem:[%s3040_s1 + $0x100] sm:$0xff]  }
  0x16   :  { %1986 = vmatprep.subr.bf16.mxu1 %v2201_v22  ;;  %v50_v4 = vld [vmem:[%s3039_s0 + $0x20] sm:$0xff] }
  0x17   :  { %1965 = vmatpush3.bf16.msra.mxu0 %v2200_v21  ;;  %v64_v6 = vpack.c.bf16 %v57_v5, %v50_v4 }
  0x18   :  { %1966 = vmatprep.subr.bf16.mxu0 %v2203_v24 }
  0x19   :  { %1987 = vmatpush3.bf16.msra.mxu1 %v2202_v23 }
  0x1a   :  { %1988 = vmatprep.subr.bf16.mxu1 %v2205_v26 }
  0x1b   :  { %1967 = vmatpush3.bf16.msra.mxu0 %v2204_v25 }
  0x1c   :  { %1968 = vmatprep.subr.bf16.mxu0 %v2207_v28 }
  0x1d   :  { %1989 = vmatpush3.bf16.msra.mxu1 %v2206_v27 }
  0x1e   :  { %1990 = vmatprep.subr.bf16.mxu1 %v2209_v30 }
  0x1f   :  { %1969 = vmatpush3.bf16.msra.mxu0 %v2208_v29 }
  0x20   :  { %1998 = vmatprep.subr.bf16.mxu0 %v2211_v38 }
  0x21   :  { %1991 = vmatpush3.bf16.msra.mxu1 %v2210_v34 }
  0x22   :  { %2067 = vmatprep.subr.bf16.mxu1 %v2418_v43  ;;  %503 = vmatmul.mubr.bf16.vlgmr.msra.gmra.mxu0 %v60_v37 }
  0x23   :  { %1999 = vmatpush3.bf16.msra.mxu0 %v2212_v42  ;;  %584 = vmatprep.mubr.bf16.mxu0 %v65_v61 }
  0x24   :  { %544 = vmatmul.mubr.bf16.vlgmr.msra.gmra.mxu1 %v62_v46  ;;  %2000 = vmatprep.subr.bf16.mxu0 %v2213_v47 }
  0x25   :  { %2069 = vmatprep.mubr.msk.bf16.mxu1 %vm2419_vm0, %v2418_v43  ;;  %2068 = vmatpush3.bf16.msra.mxu1 %v2227_v56 }
  0x26   :  { %2073 = vmatprep.subr.bf16.mxu1 %v2418_v43 }
  0x27   :  { %2001 = vmatpush3.bf16.msra.mxu0 %v2214_v48 }
  0x28   :  { %2002 = vmatprep.subr.bf16.mxu0 %v2215_v49 }
  0x2b   :  { %2003 = vmatpush3.bf16.msra.mxu0 %v2216_v50 }
  0x2c   :  { %2004 = vmatprep.subr.bf16.mxu0 %v2217_v51  ;;  %2070 = vmatmul.mubr.msk.bf16.vlgmr.msra.gmra.mxu1 %vm466_vm1, %v66_v0 }
  0x2d   :  { %2089 = vmatprep.mubr.msk.bf16.mxu1 %vm2419_vm0, %v2418_v43 }
  0x2f   :  { %2005 = vmatpush3.bf16.msra.mxu0 %v2218_v52 }
  0x30   :  { %2006 = vmatprep.subr.bf16.mxu0 %v2219_v53 }
  0x33   :  { %2007 = vmatpush3.bf16.msra.mxu0 %v2220_v54 }
  0x34   :  { %2008 = vmatprep.subr.bf16.mxu0 %v2221_v55 }
  0x37   :  { %2009 = vmatpush3.bf16.msra.mxu0 %v2222_v58 }
  0x38   :  { %2010 = vmatprep.subr.bf16.mxu0 %v2223_v59 }
  0x3b   :  { %2011 = vmatpush3.bf16.msra.mxu0 %v2224_v1 }
  0x3c   :  { %2012 = vmatprep.subr.bf16.mxu0 %v2225_v2 }
  0x3f   :  { %2013 = vmatpush3.bf16.msra.mxu0 %v2226_v3 }
  0x40   :  { %2093 = vmatprep.subr.bf16.mxu0 %v2418_v43 }
  0x42   :  { %585 = vmatmul.mubr.bf16.vlgmr.msra.gmra.mxu0 %v64_v6 }
  0x43   :  { %2109 = vmatprep.mubr.msk.bf16.mxu0 %vm2419_vm0, %v2418_v43 }
  0x44   :  { %18 = vsyncpa [#allocation3], 0  ;;  %v2228_v7 = vld [vmem:[%s3042_s3 + $0x38] sm:$0xff]   ;;  %v2229_v8 = vld [vmem:[%s3042_s3 + $0x30] sm:$0xff]   ;;  %vm1773_vm2 = vcmask 125952  }
  0x45   :  { %2074 = vmatpush3.bf16.msra.mxu1 %v2228_v7  ;;  %v2230_v9 = vld [vmem:[%s3042_s3 + $0x28] sm:$0xff]   ;;  %v2231_v10 = vld [vmem:[%s3042_s3 + $0x20] sm:$0xff]   ;;  %v2232_v11 = vld [vmem:[%s3042_s3 + $0x18] sm:$0xff]  }
  0x46   :  { %2075 = vmatprep.subr.bf16.mxu1 %v2418_v43  ;;  %v2233_v12 = vld [vmem:[%s3042_s3 + $0x10] sm:$0xff]   ;;  %v2234_v13 = vld [vmem:[%s3042_s3 + $0x8] sm:$0xff]   ;;  %v2235_v14 = vld [vmem:[%s3042_s3] sm:$0xff]  }
  0x47   :  { %v2236_v15 = vld [vmem:[%s3044_s5 + $0x38] sm:$0xff]   ;;  %v2237_v16 = vld [vmem:[%s3044_s5 + $0x30] sm:$0xff]   ;;  %v2238_v17 = vld [vmem:[%s3044_s5 + $0x28] sm:$0xff]  }
  0x48   :  { %2094 = vmatpush3.bf16.msra.mxu0 %v2236_v15  ;;  %v2239_v18 = vld [vmem:[%s3044_s5 + $0x20] sm:$0xff]   ;;  %v2240_v19 = vld [vmem:[%s3044_s5 + $0x18] sm:$0xff]   ;;  %v2241_v55 = vld [vmem:[%s3044_s5 + $0x10] sm:$0xff]  }
  0x49   :  { %2076 = vmatpush3.bf16.msra.mxu1 %v2229_v8  ;;  %2095 = vmatprep.subr.bf16.mxu0 %v2418_v43  ;;  %v1795_v32 = vld [vmem:[%s3041_s2] ss:$0 sm:$0xff]  ;;  %v2242_v56 = vld [vmem:[%s3044_s5 + $0x8] sm:$0xff]   ;;  %v2244_v58 = vld [vmem:[%s3046_s7 + $0x38] sm:$0xff]  }
  0x4a   :  { %2077 = vmatprep.subr.bf16.mxu1 %v2418_v43  ;;  %v2243_v57 = vld [vmem:[%s3044_s5] sm:$0xff]   ;;  %v2245_v59 = vld [vmem:[%s3046_s7 + $0x30] sm:$0xff]   ;;  %v2246_v60 = vld [vmem:[%s3046_s7 + $0x28] sm:$0xff]  }
  0x4b   :  { %v2247_v61 = vld [vmem:[%s3046_s7 + $0x20] sm:$0xff]   ;;  %v2248_v62 = vld [vmem:[%s3046_s7 + $0x18] sm:$0xff]  }
  0x4c   :  { %2096 = vmatpush3.bf16.msra.mxu0 %v2237_v16  ;;  %v1846_v63 = vld [vmem:[%s3043_s4] ss:$0 sm:$0xff]  ;;  %v2256_v16 = vld [vmem:[%s3048_s9 + $0x18] sm:$0xff]  }
  0x4d   :  { %2078 = vmatpush3.bf16.msra.mxu1 %v2230_v9  ;;  %2097 = vmatprep.subr.bf16.mxu0 %v2418_v43  ;;  %v2249_v9 = vld [vmem:[%s3046_s7 + $0x10] sm:$0xff]   ;;  %v2255_v15 = vld [vmem:[%s3048_s9 + $0x20] sm:$0xff]  }
  0x4e   :  { %2079 = vmatprep.subr.bf16.mxu1 %v2418_v43 }
  0x50   :  { %2098 = vmatpush3.bf16.msra.mxu0 %v2238_v17  ;;  %v1855_v17 = vld [vmem:[%s3045_s6] ss:$0 sm:$0xff] }
  0x51   :  { %2080 = vmatpush3.bf16.msra.mxu1 %v2231_v10  ;;  %2099 = vmatprep.subr.bf16.mxu0 %v2418_v43  ;;  %v2250_v10 = vld [vmem:[%s3046_s7 + $0x8] sm:$0xff]  }
  0x52   :  { %2081 = vmatprep.subr.bf16.mxu1 %v2418_v43 }
  0x54   :  { %2100 = vmatpush3.bf16.msra.mxu0 %v2239_v18 }
  0x55   :  { %2082 = vmatpush3.bf16.msra.mxu1 %v2232_v11  ;;  %2101 = vmatprep.subr.bf16.mxu0 %v2418_v43  ;;  %v2251_v11 = vld [vmem:[%s3046_s7] sm:$0xff]  }
  0x56   :  { %2083 = vmatprep.subr.bf16.mxu1 %v2418_v43 }
  0x58   :  { %2102 = vmatpush3.bf16.msra.mxu0 %v2240_v19 }
  0x59   :  { %2084 = vmatpush3.bf16.msra.mxu1 %v2233_v12  ;;  %2103 = vmatprep.subr.bf16.mxu0 %v2418_v43  ;;  %v2252_v12 = vld [vmem:[%s3048_s9 + $0x38] sm:$0xff]  }
  0x5a   :  { %2085 = vmatprep.subr.bf16.mxu1 %v2418_v43 }
  0x5c   :  { %2104 = vmatpush3.bf16.msra.mxu0 %v2241_v55  ;;  %v2271_v55 = vld [vmem:[%s3050_s11 + $0x15c] ss:$28 sps:$4 sm:$0xff]  }
  0x5d   :  { %2086 = vmatpush3.bf16.msra.mxu1 %v2234_v13  ;;  %2105 = vmatprep.subr.bf16.mxu0 %v2418_v43  ;;  %v2253_v13 = vld [vmem:[%s3048_s9 + $0x30] sm:$0xff]  }
  0x5e   :  { %2087 = vmatprep.subr.bf16.mxu1 %v2418_v43 }
  0x60   :  { %2106 = vmatpush3.bf16.msra.mxu0 %v2242_v56  ;;  %v2269_v56 = vld [vmem:[%s3050_s11 + $0x158] ss:$28 sps:$4 sm:$0xff]  }
  0x61   :  { %2088 = vmatpush3.bf16.msra.mxu1 %v2235_v14  ;;  %2107 = vmatprep.subr.bf16.mxu0 %v2418_v43  ;;  %v2254_v14 = vld [vmem:[%s3048_s9 + $0x28] sm:$0xff]  }
  0x62   :  { %2113 = vmatprep.subr.bf16.mxu1 %v2418_v43 }
  0x64   :  { %2108 = vmatpush3.bf16.msra.mxu0 %v2243_v57  ;;  %v2277_v57 = vld [vmem:[%s3050_s11 + $0x124] ss:$28 sps:$4 sm:$0xff]  }
  0x65   :  { %2133 = vmatprep.subr.bf16.mxu0 %v2418_v43 }
  0xe2   :  { %v1970_v23 = vpop.f32.mrf.mxu0 }
  0xe4   :  { %v1992_v20 = vpop.f32.mrf.mxu1  ;;  %v1971_v25 = vpop.f32.mrf.mxu0 }
  0xe5   :  { %v1972_v31 = vadd.f32 %v1971_v25, %v1970_v23 }
  0xe6   :  { %v1993_v21 = vpop.f32.mrf.mxu1  ;;  %v1973_v28 = vpop.f32.mrf.mxu0 }
  0xe7   :  { %v505_v34 = vadd.f32 %v1972_v31, %v1795_v32  ;;  %v1994_v35 = vadd.f32 %v1993_v21, %v1992_v20  ;;  %v2262_v31 = vld [vmem:[%s3050_s11 + $0x18c] ss:$28 sps:$4 sm:$0xff]  }
  0xe8   :  { %v1995_v22 = vpop.f32.mrf.mxu1  ;;  %v1974_v33 = vpop.f32.mrf.mxu0 }
  0xe9   :  { %v1975_v36 = vadd.f32 %v1974_v33, %v1973_v28  ;;  %v546_v39 = vadd.f32 %v1994_v35, %v505_v34  ;;  %v2258_v28 = vld [vmem:[%s3048_s9 + $0x8] sm:$0xff]   ;;  %v2268_v33 = vld [vmem:[%s3050_s11 + $0x154] ss:$28 sps:$4 sm:$0xff]   ;;  %v2274_v35 = vld [vmem:[%s3050_s11 + $0x11c] ss:$28 sps:$4 sm:$0xff]  }
  0xea   :  { %v1996_v24 = vpop.f32.mrf.mxu1  ;;  %v2266_v34 = vld [vmem:[%s3050_s11 + $0x150] ss:$28 sps:$4 sm:$0xff]  }
  0xeb   :  { %v508_v40 = vadd.f32 %v1975_v36, %v1795_v32  ;;  %v1997_v41 = vadd.f32 %v1996_v24, %v1995_v22  ;;  %v2265_v32 = vld [vmem:[%s3050_s11 + $0x194] ss:$28 sps:$4 sm:$0xff]  }
  0xec   :  { %v627_v26 = vpop.f32.mrf.mxu1  ;;  %v2272_v36 = vld [vmem:[%s3050_s11 + $0x118] ss:$28 sps:$4 sm:$0xff]  }
  0xed   :  { %v549_v47 = vadd.f32 %v1997_v41, %v508_v40  ;;  %v2284_v40 = vld [vmem:[%s3050_s11 + $0xa8] ss:$28 sps:$4 sm:$0xff]   ;;  %v2292_v41 = vld [vmem:[%s3050_s11 + $0x74] ss:$28 sps:$4 sm:$0xff]  }
  0xee   :  { %v2071_v27 = vpop.f32.mrf.mxu1 }
  0xef   :  { %v2257_v27 = vld [vmem:[%s3048_s9 + $0x10] sm:$0xff]  }
  0xf0   :  { %v630_v29 = vpop.f32.mrf.mxu1 }
  0xf2   :  { %v2072_v30 = vpop.f32.mrf.mxu1 }
  0xf3   :  { %v2260_v30 = vld [vmem:[%s3050_s11 + $0x188] ss:$28 sps:$4 sm:$0xff]  }
 0x102   :  { %v2014_v37 = vpop.f32.mrf.mxu0 }
 0x104   :  { %v2015_v38 = vpop.f32.mrf.mxu0 }
 0x105   :  { %v2016_v42 = vadd.f32 %v2015_v38, %v2014_v37  ;;  %v2280_v37 = vld [vmem:[%s3050_s11 + $0xe4] ss:$28 sps:$4 sm:$0xff]  }
 0x106   :  { %v2017_v44 = vpop.f32.mrf.mxu0  ;;  %v2278_v38 = vld [vmem:[%s3050_s11 + $0xe0] ss:$28 sps:$4 sm:$0xff]  }
 0x107   :  { %v587_v45 = vadd.f32 %v2016_v42, %v546_v39  ;;  %v2286_v39 = vld [vmem:[%s3050_s11 + $0xac] ss:$28 sps:$4 sm:$0xff]  }
 0x108   :  { %v2018_v46 = vpop.f32.mrf.mxu0  ;;  %v2290_v42 = vld [vmem:[%s3050_s11 + $0x70] ss:$28 sps:$4 sm:$0xff]  }
 0x109   :  { %v2019_v48 = vadd.f32 %v2018_v46, %v2017_v44  ;;  %v628_v49 = vadd.f32 %v627_v26, %v587_v45  ;;  %v1864_v44 = vld [vmem:[%s3047_s8] ss:$0 sm:$0xff] }
 0x10b   :  { %v590_v50 = vadd.f32 %v2019_v48, %v549_v47  ;;  %v634_v52 = vmax.f32 %v628_v49, 0.0 }
 0x10d   :  { %v631_v51 = vadd.f32 %v630_v29, %v590_v50  ;;  %v2259_v29 = vld [vmem:[%s3048_s9] sm:$0xff]  }
 0x10f   :  { %v635_v53 = vmax.f32 %v631_v51, 0.0 }
 0x111   :  { %v636_v54 = vpack.c.bf16 %v635_v53, %v634_v52  ;;  %v2263_v53 = vld [vmem:[%s3050_s11 + $0x190] ss:$28 sps:$4 sm:$0xff]  }
 0x113   :  { %2090 = vmatmul.mubr.bf16.vlgmr.msra.gmra.mxu1 %v636_v54 }
 0x114   :  { %2129 = vmatprep.mubr.msk.bf16.mxu1 %vm2419_vm0, %v2418_v43  ;;  %2114 = vmatpush3.bf16.msra.mxu1 %v2244_v58  ;;  %v2275_v58 = vld [vmem:[%s3050_s11 + $0x120] ss:$28 sps:$4 sm:$0xff]  }
 0x115   :  { %2115 = vmatprep.subr.bf16.mxu1 %v2418_v43 }
 0x118   :  { %2116 = vmatpush3.bf16.msra.mxu1 %v2245_v59  ;;  %v2283_v59 = vld [vmem:[%s3050_s11 + $0xec] ss:$28 sps:$4 sm:$0xff]  }
 0x119   :  { %2117 = vmatprep.subr.bf16.mxu1 %v2418_v43 }
 0x11c   :  { %2118 = vmatpush3.bf16.msra.mxu1 %v2246_v60  ;;  %v2281_v60 = vld [vmem:[%s3050_s11 + $0xe8] ss:$28 sps:$4 sm:$0xff]  }
 0x11d   :  { %2119 = vmatprep.subr.bf16.mxu1 %v2418_v43 }
 0x120   :  { %2120 = vmatpush3.bf16.msra.mxu1 %v2247_v61  ;;  %v2289_v61 = vld [vmem:[%s3050_s11 + $0xb4] ss:$28 sps:$4 sm:$0xff]  }
 0x121   :  { %2121 = vmatprep.subr.bf16.mxu1 %v2418_v43 }
 0x124   :  { %2122 = vmatpush3.bf16.msra.mxu1 %v2248_v62  ;;  %v2287_v62 = vld [vmem:[%s3050_s11 + $0xb0] ss:$28 sps:$4 sm:$0xff]  }
 0x125   :  { %2123 = vmatprep.subr.bf16.mxu1 %v2418_v43 }
 0x128   :  { %2124 = vmatpush3.bf16.msra.mxu1 %v2249_v9  ;;  %v2310_v9 = vld [vmem:[%s3050_s11 + $0x19c] ss:$28 sps:$4 sm:$0xff]  }
 0x129   :  { %2125 = vmatprep.subr.bf16.mxu1 %v2418_v43 }
 0x12c   :  { %2126 = vmatpush3.bf16.msra.mxu1 %v2250_v10  ;;  %v2420_v10 = vmov 0  }
 0x12d   :  { %2127 = vmatprep.subr.bf16.mxu1 %v2418_v43 }
 0x130   :  { %2128 = vmatpush3.bf16.msra.mxu1 %v2251_v11  ;;  %v1873_v11 = vld [vmem:[%s3049_s10] ss:$0 sm:$0xff] }
 0x131   :  { %1486 = vmatprep.subr.bf16.mxu1 %v2262_v31  ;;  %v2323_v31 = vld [vmem:[%s3050_s11 + $0xf8] ss:$28 sps:$4 sm:$0xff]  }
 0x1d3   :  { %v742_v0 = vpop.f32.mrf.mxu1 }
 0x1d4   :  { %v743_v2 = vadd.f32 %v1846_v63, %v742_v0  ;;  %v2293_v0 = vld [vmem:[%s3050_s11 + $0x78] ss:$28 sps:$4 sm:$0xff]  }
 0x1d5   :  { %v2091_v1 = vpop.f32.mrf.mxu1 }
 0x1d6   :  { %v749_v6 = vmax.f32 %v743_v2, 0.0  ;;  %v2298_v1 = vld [vmem:[%s3050_s11 + $0x3c] ss:$28 sps:$4 sm:$0xff]   ;;  %v2301_v2 = vld [vmem:[%s3050_s11 + $0x44] ss:$28 sps:$4 sm:$0xff]  }
 0x1d7   :  { %v745_v3 = vpop.f32.mrf.mxu1 }
 0x1d8   :  { %v746_v4 = vadd.f32 %v1846_v63, %v745_v3  ;;  %v2295_v63 = vld [vmem:[%s3050_s11 + $0x7c] ss:$28 sps:$4 sm:$0xff]  }
 0x1d9   :  { %v2092_v5 = vpop.f32.mrf.mxu1  ;;  %v2296_v3 = vld [vmem:[%s3050_s11 + $0x38] ss:$28 sps:$4 sm:$0xff]  }
 0x1da   :  { %v750_v7 = vmax.f32 %v746_v4, 0.0  ;;  %v2299_v4 = vld [vmem:[%s3050_s11 + $0x40] ss:$28 sps:$4 sm:$0xff]  }
 0x1db   :  { %v2304_v5 = vld [vmem:[%s3050_s11 + $0x4] ss:$28 sps:$4 sm:$0xff]  }
 0x1dc   :  { %v751_v8 = vpack.c.bf16 %v750_v7, %v749_v6  ;;  %v2307_v6 = vld [vmem:[%s3050_s11 + $0xc] ss:$28 sps:$4 sm:$0xff]   ;;  %v2302_v7 = vld [vmem:[%s3050_s11] ss:$28 sps:$4 sm:$0xff]  }
 0x1de   :  { %2110 = vmatmul.mubr.bf16.vlgmr.msra.gmra.mxu0 %v751_v8  ;;  %v2305_v8 = vld [vmem:[%s3050_s11 + $0x8] ss:$28 sps:$4 sm:$0xff]  }
 0x1df   :  { %2149 = vmatprep.mubr.msk.bf16.mxu0 %vm2419_vm0, %v2418_v43  ;;  %2134 = vmatpush3.bf16.msra.mxu0 %v2252_v12 }
 0x1e0   :  { %2135 = vmatprep.subr.bf16.mxu0 %v2418_v43 }
 0x1e3   :  { %2136 = vmatpush3.bf16.msra.mxu0 %v2253_v13 }
 0x1e4   :  { %2137 = vmatprep.subr.bf16.mxu0 %v2418_v43 }
 0x1e7   :  { %2138 = vmatpush3.bf16.msra.mxu0 %v2254_v14 }
 0x1e8   :  { %2139 = vmatprep.subr.bf16.mxu0 %v2418_v43 }
 0x1eb   :  { %2140 = vmatpush3.bf16.msra.mxu0 %v2255_v15 }
 0x1ec   :  { %2141 = vmatprep.subr.bf16.mxu0 %v2418_v43 }
 0x1ef   :  { %2142 = vmatpush3.bf16.msra.mxu0 %v2256_v16 }
 0x1f0   :  { %2143 = vmatprep.subr.bf16.mxu0 %v2418_v43 }
 0x1f3   :  { %2144 = vmatpush3.bf16.msra.mxu0 %v2257_v27  ;;  %v2316_v27 = vld [vmem:[%s3050_s11 + $0x128] ss:$28 sps:$4 sm:$0xff]  }
 0x1f4   :  { %2145 = vmatprep.subr.bf16.mxu0 %v2418_v43 }
 0x1f7   :  { %2146 = vmatpush3.bf16.msra.mxu0 %v2258_v28  ;;  %v2319_v28 = vld [vmem:[%s3050_s11 + $0x130] ss:$28 sps:$4 sm:$0xff]  }
 0x1f8   :  { %2147 = vmatprep.subr.bf16.mxu0 %v2418_v43 }
 0x1fb   :  { %2148 = vmatpush3.bf16.msra.mxu0 %v2259_v29  ;;  %v2322_v29 = vld [vmem:[%s3050_s11 + $0xf4] ss:$28 sps:$4 sm:$0xff]  }
 0x1fc   :  { %1529 = vmatprep.subr.bf16.mxu0 %v2265_v32  ;;  %v2326_v32 = vld [vmem:[%s3050_s11 + $0xbc] ss:$28 sps:$4 sm:$0xff]  }
 0x29e   :  { %v857_v18 = vpop.f32.mrf.mxu0 }
 0x29f   :  { %v858_v20 = vadd.f32 %v1855_v17, %v857_v18 }
 0x2a0   :  { %v2111_v19 = vpop.f32.mrf.mxu0 }
 0x2a1   :  { %v864_v24 = vmax.f32 %v858_v20, 0.0  ;;  %v2308_v20 = vld [vmem:[%s3050_s11 + $0x198] ss:$28 sps:$4 sm:$0xff]  }
 0x2a2   :  { %v860_v21 = vpop.f32.mrf.mxu0 }
 0x2a3   :  { %v861_v22 = vadd.f32 %v1855_v17, %v860_v21  ;;  %v2311_v21 = vld [vmem:[%s3050_s11 + $0x1a0] ss:$28 sps:$4 sm:$0xff]  }
 0x2a4   :  { %v2112_v23 = vpop.f32.mrf.mxu0 }
 0x2a5   :  { %v865_v25 = vmax.f32 %v861_v22, 0.0  ;;  %v2314_v23 = vld [vmem:[%s3050_s11 + $0x164] ss:$28 sps:$4 sm:$0xff]  }
 0x2a7   :  { %v866_v26 = vpack.c.bf16 %v865_v25, %v864_v24  ;;  %v2312_v24 = vld [vmem:[%s3050_s11 + $0x160] ss:$28 sps:$4 sm:$0xff]   ;;  %v2315_v25 = vld [vmem:[%s3050_s11 + $0x168] ss:$28 sps:$4 sm:$0xff]  }
 0x2a9   :  { %2130 = vmatmul.mubr.bf16.vlgmr.msra.gmra.mxu1 %v866_v26  ;;  %v2318_v26 = vld [vmem:[%s3050_s11 + $0x12c] ss:$28 sps:$4 sm:$0xff]  }
 0x2aa   :  { %1487 = vmatpush1.bf16.msra.mxu1 %v2260_v30  ;;  %1518 = vmatprep.mubr.bf16.mxu1 %v2420_v10  ;;  %v2320_v30 = vld [vmem:[%s3050_s11 + $0xf0] ss:$28 sps:$4 sm:$0xff]  }
 0x2ab   :  { %1488 = vmatprep.subr.bf16.mxu1 %v2268_v33  ;;  %v2324_v33 = vld [vmem:[%s3050_s11 + $0xb8] ss:$28 sps:$4 sm:$0xff]  }
 0x2ae   :  { %1489 = vmatpush1.bf16.msra.mxu1 %v2266_v34  ;;  %v2327_v34 = vld [vmem:[%s3050_s11 + $0xc0] ss:$28 sps:$4 sm:$0xff]  }
 0x2af   :  { %1490 = vmatprep.subr.bf16.mxu1 %v2274_v35  ;;  %v2330_v35 = vld [vmem:[%s3050_s11 + $0x84] ss:$28 sps:$4 sm:$0xff]  }
 0x2b2   :  { %1491 = vmatpush1.bf16.msra.mxu1 %v2272_v36  ;;  %v2328_v36 = vld [vmem:[%s3050_s11 + $0x80] ss:$28 sps:$4 sm:$0xff]  }
 0x2b3   :  { %1492 = vmatprep.subr.bf16.mxu1 %v2280_v37  ;;  %v2331_v37 = vld [vmem:[%s3050_s11 + $0x88] ss:$28 sps:$4 sm:$0xff]  }
 0x2b6   :  { %1493 = vmatpush1.bf16.msra.mxu1 %v2278_v38  ;;  %v2334_v38 = vld [vmem:[%s3050_s11 + $0x4c] ss:$28 sps:$4 sm:$0xff]  }
 0x2b7   :  { %1494 = vmatprep.subr.bf16.mxu1 %v2286_v39  ;;  %v2332_v39 = vld [vmem:[%s3050_s11 + $0x48] ss:$28 sps:$4 sm:$0xff]  }
 0x2ba   :  { %1495 = vmatpush1.bf16.msra.mxu1 %v2284_v40  ;;  %v2335_v40 = vld [vmem:[%s3050_s11 + $0x50] ss:$28 sps:$4 sm:$0xff]  }
 0x2bb   :  { %1496 = vmatprep.subr.bf16.mxu1 %v2292_v41  ;;  %v2338_v41 = vld [vmem:[%s3050_s11 + $0x14] ss:$28 sps:$4 sm:$0xff]  }
 0x2be   :  { %1497 = vmatpush1.bf16.msra.mxu1 %v2290_v42  ;;  %v2336_v42 = vld [vmem:[%s3050_s11 + $0x10] ss:$28 sps:$4 sm:$0xff]  }
 0x2bf   :  { %1498 = vmatprep.subr.bf16.mxu1 %v2298_v1 }
 0x2c2   :  { %1499 = vmatpush1.bf16.msra.mxu1 %v2296_v3 }
 0x2c3   :  { %1500 = vmatprep.subr.bf16.mxu1 %v2304_v5 }
 0x2c6   :  { %1501 = vmatpush1.bf16.msra.mxu1 %v2302_v7 }
 0x2c7   :  { %1572 = vmatprep.subr.bf16.mxu1 %v2310_v9 }
 0x369   :  { %v972_v45 = vpop.f32.mrf.mxu1 }
 0x36a   :  { %v973_v47 = vadd.f32 %v1864_v44, %v972_v45  ;;  %v1163_v45 = vlaneseq }
 0x36b   :  { %v2131_v46 = vpop.f32.mrf.mxu1 }
 0x36c   :  { %v979_v51 = vmax.f32 %v973_v47, 0.0  ;;  %v3015_v46 = vshrl.u32 %v1163_v45, 7 }
 0x36d   :  { %v975_v48 = vpop.f32.mrf.mxu1 }
 0x36e   :  { %v976_v49 = vadd.f32 %v1864_v44, %v975_v48  ;;  %v2339_v44 = vld [vmem:[%s3050_s11 + $0x18] ss:$28 sps:$4 sm:$0xff]   ;;  %v1165_v47 = vsub.s32 0, %v3015_v46  ;;  %v1173_v48 = vsub.s32 2, %v3015_v46  ;;  %s2421_s11 = smov [#allocation2]  }
 0x36f   :  { %v2132_v50 = vpop.f32.mrf.mxu1 }
 0x370   :  { %v980_v52 = vmax.f32 %v976_v49, 0.0  ;;  %v3022_v49 = vld [vmem:[%s3051_s12] sm:$0x7f]  ;;  %v1169_v50 = vsub.s32 1, %v3015_v46  ;;  %s1784_s12 = sshll.u32 %s2421_s11, 4  ;;  %s1785_s12 = int_to_ptr.vmem [resolvable:$true] %s1784_s12 }
 0x371   :  { %s2396_s9 = scalar_lea.vmem %s1785_s12, 896  ;;  %p2401_p1 = scmp.lt.s32.totalorder %s1785_s12, %s1785_s12 }
 0x372   :  { %v981_v54 = vpack.c.bf16 %v980_v52, %v979_v51  ;;  %v1166_v51 = vrot.slane %v3022_v49, %v1165_v47  ;;  %v1174_v52 = vrot.slane %v3022_v49, %v1173_v48  ;;  %p2397_p0 = scmp.ne.s32.totalorder %s1785_s12, %s2396_s9  ;;  %p2402_p2 = scmp.lt.s32.totalorder %s2396_s9, %s2396_s9 }
 0x374   :  { %2150 = vmatmul.mubr.bf16.vlgmr.msra.gmra.mxu0 %v981_v54  ;;  %p2403_p3 = por %p2402_p2, %p2401_p1 }
 0x375   :  { %1530 = vmatpush1.bf16.msra.mxu0 %v2263_v53  ;;  %1561 = vmatprep.mubr.bf16.mxu0 %v2420_v10  ;;  %v1170_v53 = vrot.slane %v3022_v49, %v1169_v50 }
 0x376   :  { %1531 = vmatprep.subr.bf16.mxu0 %v2271_v55  ;;  %p2404_p4 = pnand %p2403_p3, %p2397_p0 }
 0x379   :  { %1532 = vmatpush1.bf16.msra.mxu0 %v2269_v56 }
 0x37a   :  { %1533 = vmatprep.subr.bf16.mxu0 %v2277_v57 }
 0x37d   :  { %1534 = vmatpush1.bf16.msra.mxu0 %v2275_v58 }
 0x37e   :  { %1535 = vmatprep.subr.bf16.mxu0 %v2283_v59 }
 0x381   :  { %1536 = vmatpush1.bf16.msra.mxu0 %v2281_v60 }
 0x382   :  { %1537 = vmatprep.subr.bf16.mxu0 %v2289_v61 }
 0x385   :  { %1538 = vmatpush1.bf16.msra.mxu0 %v2287_v62 }
 0x386   :  { %1539 = vmatprep.subr.bf16.mxu0 %v2295_v63 }
 0x389   :  { %1540 = vmatpush1.bf16.msra.mxu0 %v2293_v0 }
 0x38a   :  { %1541 = vmatprep.subr.bf16.mxu0 %v2301_v2 }
 0x38d   :  { %1542 = vmatpush1.bf16.msra.mxu0 %v2299_v4 }
 0x38e   :  { %1543 = vmatprep.subr.bf16.mxu0 %v2307_v6 }
 0x391   :  { %1544 = vmatpush1.bf16.msra.mxu0 %v2305_v8 }
 0x392   :  { %2153 = vmatprep.subr.bf16.mxu0 %v2418_v43 }
 0x434   :  { %v1087_v12 = vpop.f32.mrf.mxu0 }
 0x435   :  { %v1088_v14 = vadd.f32 %v1873_v11, %v1087_v12 }
 0x436   :  { %v2151_v13 = vpop.f32.mrf.mxu0 }
 0x437   :  { %v1094_v18 = vmax.f32 %v1088_v14, 0.0 }
 0x438   :  { %v1090_v15 = vpop.f32.mrf.mxu0 }
 0x439   :  { %v1091_v16 = vadd.f32 %v1873_v11, %v1090_v15 }
 0x43a   :  { %v2152_v17 = vpop.f32.mrf.mxu0 }
 0x43b   :  { %v1095_v19 = vmax.f32 %v1091_v16, 0.0 }
 0x43d   :  { %v1096_v22 = vpack.c.bf16 %v1095_v19, %v1094_v18 }
 0x43f   :  { %1519 = vmatmul.mubr.bf16.vlgmr.msra.gmra.mxu1 %v1096_v22  ;;  %1562 = vmatmul.mubr.bf16.vlgmr.msra.gmra.mxu0 %v1096_v22 }
 0x440   :  { %1573 = vmatpush1.bf16.msra.mxu1 %v2308_v20  ;;  %2154 = vmatpush3.bf16.msra.mxu0 %v2311_v21 }
 0x441   :  { %1574 = vmatprep.subr.bf16.mxu1 %v2314_v23  ;;  %2155 = vmatprep.subr.bf16.mxu0 %v2418_v43 }
 0x442   :  { %1604 = vmatprep.mubr.bf16.mxu1 %v2420_v10  ;;  %2169 = vmatprep.mubr.msk.bf16.mxu0 %vm2419_vm0, %v2418_v43 }
 0x444   :  { %1575 = vmatpush1.bf16.msra.mxu1 %v2312_v24  ;;  %2156 = vmatpush3.bf16.msra.mxu0 %v2315_v25 }
 0x445   :  { %1576 = vmatprep.subr.bf16.mxu1 %v2318_v26  ;;  %2157 = vmatprep.subr.bf16.mxu0 %v2418_v43 }
 0x448   :  { %1577 = vmatpush1.bf16.msra.mxu1 %v2316_v27  ;;  %2158 = vmatpush3.bf16.msra.mxu0 %v2319_v28 }
 0x449   :  { %1578 = vmatprep.subr.bf16.mxu1 %v2322_v29  ;;  %2159 = vmatprep.subr.bf16.mxu0 %v2418_v43 }
 0x44c   :  { %1579 = vmatpush1.bf16.msra.mxu1 %v2320_v30  ;;  %2160 = vmatpush3.bf16.msra.mxu0 %v2323_v31 }
 0x44d   :  { %1580 = vmatprep.subr.bf16.mxu1 %v2326_v32  ;;  %2161 = vmatprep.subr.bf16.mxu0 %v2418_v43  ;;  %v1181_v32 = vsub.s32 4, %v3015_v46 }
 0x450   :  { %1581 = vmatpush1.bf16.msra.mxu1 %v2324_v33  ;;  %2162 = vmatpush3.bf16.msra.mxu0 %v2327_v34  ;;  %v1189_v33 = vsub.s32 6, %v3015_v46 }
 0x451   :  { %1582 = vmatprep.subr.bf16.mxu1 %v2330_v35  ;;  %2163 = vmatprep.subr.bf16.mxu0 %v2418_v43 }
 0x454   :  { %1583 = vmatpush1.bf16.msra.mxu1 %v2328_v36  ;;  %2164 = vmatpush3.bf16.msra.mxu0 %v2331_v37 }
 0x455   :  { %1584 = vmatprep.subr.bf16.mxu1 %v2334_v38  ;;  %2165 = vmatprep.subr.bf16.mxu0 %v2418_v43  ;;  %v1185_v38 = vsub.s32 5, %v3015_v46 }
 0x457   :  { %v1186_v45 = vrot.slane %v3022_v49, %v1185_v38 }
 0x458   :  { %1585 = vmatpush1.bf16.msra.mxu1 %v2332_v39  ;;  %2166 = vmatpush3.bf16.msra.mxu0 %v2335_v40 }
 0x459   :  { %1586 = vmatprep.subr.bf16.mxu1 %v2338_v41  ;;  %2167 = vmatprep.subr.bf16.mxu0 %v2418_v43  ;;  %v1177_v43 = vsub.s32 3, %v3015_v46 }
 0x45b   :  { %v1178_v54 = vrot.slane %v3022_v49, %v1177_v43 }
 0x45c   :  { %1587 = vmatpush1.bf16.msra.mxu1 %v2336_v42  ;;  %2168 = vmatpush3.bf16.msra.mxu0 %v2339_v44  ;;  %v1182_v42 = vrot.slane %v3022_v49, %v1181_v32  ;;  %v1190_v44 = vrot.slane %v3022_v49, %v1189_v33 }
 0x45f   :  { %1605 = vmatmul.mubr.bf16.vlgmr.msra.gmra.mxu1 %v1096_v22  ;;  %2170 = vmatmul.mubr.bf16.vlgmr.msra.gmra.mxu0 %v1096_v22 }
 0x4ff   :  { %v1520_v55 = vpop.f32.mrf.mxu1  ;;  %v1563_v56 = vpop.f32.mrf.mxu0 }
 0x500   :  { %v1521_v57 = vadd.f32 %v1520_v55, %v1166_v51  ;;  %v1564_v58 = vadd.f32 %v1563_v56, %v1174_v52 }
 0x501   :  { %v1522_v59 = vpop.f32.mrf.mxu1  ;;  %v1565_v60 = vpop.f32.mrf.mxu0 }
 0x502   :  { %v1656_v61 = vsub.f32 0.0, %v1521_v57  ;;  %v1658_v62 = vsub.f32 0.0, %v1564_v58  ;;  %v1523_v63 = vadd.f32 %v1522_v59, %v1170_v53  ;;  %v1566_v0 = vadd.f32 %v1565_v60, %v1178_v54 }
 0x503   :  { %v1524_v1 = vpop.f32.mrf.mxu1  ;;  %v1567_v2 = vpop.f32.mrf.mxu0 }
 0x504   :  { %v1670_v3 = vmul.f32 1.442695, %v1656_v61  ;;  %v1674_v4 = vmul.f32 1.442695, %v1658_v62  ;;  %v1657_v5 = vsub.f32 0.0, %v1523_v63  ;;  %v1659_v6 = vsub.f32 0.0, %v1566_v0 }
 0x505   :  { %v1525_v7 = vadd.f32 %v1524_v1, %v1166_v51  ;;  %v1568_v8 = vadd.f32 %v1567_v2, %v1174_v52  ;;  %v1526_v9 = vpop.f32.mrf.mxu1  ;;  %v1569_v10 = vpop.f32.mrf.mxu0 }
 0x506   :  { %2340 = vpow2.f32 %v1670_v3  ;;  %v1672_v11 = vmul.f32 1.442695, %v1657_v5  ;;  %v1676_v12 = vmul.f32 1.442695, %v1659_v6  ;;  %v1527_v13 = vadd.f32 %v1526_v9, %v1170_v53 }
 0x507   :  { %2342 = vpow2.f32 %v1674_v4  ;;  %v1663_v14 = vsub.f32 0.0, %v1525_v7  ;;  %v1665_v15 = vsub.f32 0.0, %v1568_v8  ;;  %v1570_v16 = vadd.f32 %v1569_v10, %v1178_v54 }
 0x508   :  { %2344 = vpow2.f32 %v1672_v11  ;;  %v1664_v17 = vsub.f32 0.0, %v1527_v13 }
 0x509   :  { %2346 = vpow2.f32 %v1676_v12  ;;  %v1684_v18 = vmul.f32 1.442695, %v1663_v14  ;;  %v1688_v19 = vmul.f32 1.442695, %v1665_v15  ;;  %v1666_v20 = vsub.f32 0.0, %v1570_v16 }
 0x50a   :  { %v1686_v21 = vmul.f32 1.442695, %v1664_v17 }
 0x50b   :  { %2348 = vpow2.f32 %v1684_v18  ;;  %v1690_v22 = vmul.f32 1.442695, %v1666_v20 }
 0x50c   :  { %2350 = vpow2.f32 %v1688_v19 }
 0x50d   :  { %2352 = vpow2.f32 %v1686_v21 }
 0x50e   :  { %2354 = vpow2.f32 %v1690_v22 }
 0x513   :  { %v2341_v23 = vpop.eup %2340 }
 0x514   :  { %v2343_v24 = vpop.eup %2342  ;;  %v1698_v25 = vadd.f32 1.0, %v2341_v23 }
 0x515   :  { %v2345_v26 = vpop.eup %2344  ;;  %v1700_v27 = vadd.f32 1.0, %v2343_v24 }
 0x516   :  { %v2347_v28 = vpop.eup %2346  ;;  %2356 = vrcp.f32 %v1698_v25  ;;  %v1699_v29 = vadd.f32 1.0, %v2345_v26 }
 0x517   :  { %2358 = vrcp.f32 %v1700_v27  ;;  %v1701_v30 = vadd.f32 1.0, %v2347_v28 }
 0x518   :  { %v2349_v31 = vpop.eup %2348  ;;  %2360 = vrcp.f32 %v1699_v29 }
 0x519   :  { %v2351_v34 = vpop.eup %2350  ;;  %2362 = vrcp.f32 %v1701_v30  ;;  %v1705_v35 = vadd.f32 1.0, %v2349_v31 }
 0x51a   :  { %v2353_v36 = vpop.eup %2352  ;;  %v1707_v37 = vadd.f32 1.0, %v2351_v34 }
 0x51b   :  { %v2355_v39 = vpop.eup %2354  ;;  %2364 = vrcp.f32 %v1705_v35  ;;  %v1706_v40 = vadd.f32 1.0, %v2353_v36 }
 0x51c   :  { %2366 = vrcp.f32 %v1707_v37  ;;  %v1708_v41 = vadd.f32 1.0, %v2355_v39 }
 0x51d   :  { %2368 = vrcp.f32 %v1706_v40 }
 0x51e   :  { %2370 = vrcp.f32 %v1708_v41 }
 0x51f   :  { %v1606_v47 = vpop.f32.mrf.mxu1  ;;  %v1649_v48 = vpop.f32.mrf.mxu0 }
 0x520   :  { %v1607_v50 = vadd.f32 %v1606_v47, %v1182_v42  ;;  %v1650_v43 = vadd.f32 %v1649_v48, %v1190_v44 }
 0x521   :  { %v1608_v51 = vpop.f32.mrf.mxu1  ;;  %v2171_v52 = vpop.f32.mrf.mxu0 }
 0x522   :  { %v1660_v46 = vsub.f32 0.0, %v1607_v50  ;;  %v1662_v53 = vsub.f32 0.0, %v1650_v43  ;;  %v1609_v54 = vadd.f32 %v1608_v51, %v1186_v45 }
 0x523   :  { %v2357_v55 = vpop.eup %2356  ;;  %v1610_v56 = vpop.f32.mrf.mxu1 }
 0x524   :  { %v1652_v57 = vpop.f32.mrf.mxu0  ;;  %v2359_v58 = vpop.eup %2358  ;;  %v1678_v59 = vmul.f32 1.442695, %v1660_v46  ;;  %v1682_v60 = vmul.f32 1.442695, %v1662_v53  ;;  %v1661_v61 = vsub.f32 0.0, %v1609_v54  ;;  %v1611_v62 = vadd.f32 %v1610_v56, %v1182_v42 }
 0x525   :  { %v2361_v63 = vpop.eup %2360  ;;  %v1653_v0 = vadd.f32 %v1652_v57, %v1190_v44  ;;  %v1612_v49 = vpop.f32.mrf.mxu1 }
 0x526   :  { %v2172_v1 = vpop.f32.mrf.mxu0  ;;  %v2363_v2 = vpop.eup %2362  ;;  %v1946_v3 = vpack.c.bf16 %v2361_v63, %v2357_v55  ;;  %2372 = vpow2.f32 %v1678_v59  ;;  %v1680_v4 = vmul.f32 1.442695, %v1661_v61  ;;  %v1667_v5 = vsub.f32 0.0, %v1611_v62 }
 0x527   :  { %v1947_v6 = vpack.c.bf16 %v2363_v2, %v2359_v58  ;;  %2374 = vpow2.f32 %v1682_v60  ;;  %v1669_v7 = vsub.f32 0.0, %v1653_v0  ;;  %v1613_v8 = vadd.f32 %v1612_v49, %v1186_v45 }
 0x528   :  { %v2365_v9 = vpop.eup %2364  ;;  %1770 = vst [vmem:[#allocation2] sm:$0xff] %v1946_v3  ;;  %2376 = vpow2.f32 %v1680_v4  ;;  %v1692_v10 = vmul.f32 1.442695, %v1667_v5 }
 0x529   :  { %v2367_v11 = vpop.eup %2366  ;;  %1771 = vst [vmem:[#allocation2 + $0x8] sm:$0xff] %v1947_v6  ;;  %v1696_v12 = vmul.f32 1.442695, %v1669_v7  ;;  %v1668_v13 = vsub.f32 0.0, %v1613_v8 }
 0x52a   :  { %v2369_v14 = vpop.eup %2368  ;;  %2378 = vpow2.f32 %v1692_v10 }
 0x52b   :  { %v2371_v15 = vpop.eup %2370  ;;  %v1950_v16 = vpack.c.bf16 %v2369_v14, %v2365_v9  ;;  %2380 = vpow2.f32 %v1696_v12  ;;  %v1694_v17 = vmul.f32 1.442695, %v1668_v13 }
 0x52c   :  { %v1951_v18 = vpack.c.bf16 %v2371_v15, %v2367_v11 }
 0x52d   :  { %1775 = vst [vmem:[#allocation2 + $0x1c] sm:$0xff] %v1950_v16  ;;  %2382 = vpow2.f32 %v1694_v17 }
 0x52e   :  { %1776 = vst [vmem:[#allocation2 + $0x24] sm:$0xff] %v1951_v18 }
 0x533   :  { %v2373_v19 = vpop.eup %2372 }
 0x534   :  { %v2375_v20 = vpop.eup %2374  ;;  %v1702_v21 = vadd.f32 1.0, %v2373_v19 }
 0x535   :  { %v2377_v22 = vpop.eup %2376  ;;  %v1704_v23 = vadd.f32 1.0, %v2375_v20 }
 0x536   :  { %2384 = vrcp.f32 %v1702_v21  ;;  %v1703_v24 = vadd.f32 1.0, %v2377_v22 }
 0x537   :  { %v2379_v25 = vpop.eup %2378  ;;  %2386 = vrcp.f32 %v1704_v23 }
 0x538   :  { %v2381_v26 = vpop.eup %2380  ;;  %2388 = vrcp.f32 %v1703_v24  ;;  %v1709_v27 = vadd.f32 1.0, %v2379_v25 }
 0x539   :  { %v1711_v28 = vadd.f32 1.0, %v2381_v26 }
 0x53a   :  { %v2383_v29 = vpop.eup %2382 }
 0x53b   :  { %2390 = vrcp.f32 %v1711_v28  ;;  %v1710_v30 = vadd.f32 1.0, %v2383_v29 }
 0x53c   :  { %2392 = vrcp.f32 %v1709_v27 }
 0x53d   :  { %2394 = vrcp.f32 %v1710_v30 }
 0x543   :  { %v2385_v31 = vpop.eup %2384 }
 0x544   :  { %v2387_v32 = vpop.eup %2386 }
 0x545   :  { %v2389_v33 = vpop.eup %2388  ;;  %v1949_v34 = vpack.c.bf16 %v2387_v32, %v2387_v32 }
 0x546   :  { %v1948_v35 = vpack.c.bf16 %v2389_v33, %v2385_v31 }
 0x547   :  { %1774 = vst.msk [vmem:[#allocation2 + $0x18] sm:$0xf] %vm1773_vm2, %v1949_v34 }
 0x548   :  { %v2391_v36 = vpop.eup %2390  ;;  %1772 = vst [vmem:[#allocation2 + $0x10] sm:$0xff] %v1948_v35 }
 0x549   :  { %v2393_v37 = vpop.eup %2392  ;;  %v1953_v38 = vpack.c.bf16 %v2391_v36, %v2391_v36 }
 0x54a   :  { %v2395_v39 = vpop.eup %2394 }
 0x54b   :  { %1778 = vst.msk [vmem:[#allocation2 + $0x34] sm:$0xf] %vm1773_vm2, %v1953_v38  ;;  %v1952_v40 = vpack.c.bf16 %v2395_v39, %v2393_v37 }
 0x54d   :  { %1777 = vst [vmem:[#allocation2 + $0x2c] sm:$0xff] %v1952_v40 }
 0x54e   :  { %2407 = shalt.err (!%p2404_p4)
}
 0x54f   :  { %s2422_s22 = smov 448   ;;  %s2423_s23 = smov 28  }
 0x550   :  { %1790 = dma.vmem_to_hbm [thread:$0]  %s1785_s12, 896, %s3052_s13, [#allocation3], %s2422_s22, %s2422_s22, %s2423_s23  }
 0x551   :  { %2416 = dma.done.wait [#allocation3], 896  }
 0x552   :  { %2417 = vsyncadd [#allocation3], 4294966400 }
 0x553   :  { %1794 = vsyncpa [#allocation3], 1 }

</bundles_post_ra>
